<compile_context>
chip_gen: v7x
topology: tpu7x:2x2x1
jax: 0.10.0
libtpu: 0.0.40
codegen_flags: <defaults>
</compile_context>

<pallas_src>
import functools

import jax
import jax.numpy as jnp
from jax.experimental import pallas as pl
from jax.experimental.pallas import tpu as pltpu


# --------------------------------------------------------------------------- #
# Kernel
# --------------------------------------------------------------------------- #
def _mlp_res_kernel(x_ref, wcat_ref, b1_ref, w2_ref, b2s_ref, o_ref, *, hidden):
    # x_ref: (1, C_in, TN) f32 block (NCW layout, points on the lane axis).
    # Cast to bf16 in-kernel (free VPU work, hidden under the DMA).
    x = x_ref[0].astype(jnp.bfloat16)                         # (C_in, TN)

    # Fused conv_1 + conv_shortcut: one MXU push, (hidden + out_dim, TN), f32 acc.
    hs = jnp.dot(wcat_ref[...], x, preferred_element_type=jnp.float32)

    # hidden is padded to a multiple of 8 -> sublane-aligned slice, no relayout.
    h = jnp.maximum(hs[:hidden, :] + b1_ref[...], 0.0)        # (hidden, TN) f32
    sc = hs[hidden:, :]                                       # (out_dim, TN) f32 (no bias; bs folded into b2s)

    # conv_2 on the ReLU'd hidden activations (bf16 MXU inputs, f32 acc).
    out = jnp.dot(w2_ref[...], h.astype(w2_ref.dtype),
                  preferred_element_type=jnp.float32)
    out = out + b2s_ref[...] + sc                             # b2s = b2 + bs

    o_ref[0] = out.astype(o_ref.dtype)                        # lane-dense store


# --------------------------------------------------------------------------- #
# Packing / tiling helpers
# --------------------------------------------------------------------------- #
def _round_up(x, m):
    return ((x + m - 1) // m) * m


def _pick_tile_n(n_padded, batch, min_steps=8):
    """Largest lane tile dividing the padded N that still leaves >= min_steps
    grid steps total (>= 4 per TensorCore on a 2-TC v7x)."""
    candidates = (2048, 1024, 512, 256, 128)
    for t in candidates:
        if n_padded % t == 0 and batch * (n_padded // t) >= min_steps:
            return t
    for t in candidates:  # tiny-N fallback: largest divisor (n_padded is a mult. of 128)
        if n_padded % t == 0:
            return t
    return 128


def pack_params(params):
    """One-time packing: pad hidden to a multiple of 8, fuse W1/Ws, fold bs
    into b2, cast matmul operands to bf16.  Call once at init."""
    w1, b1, w2, b2, ws, bs = params
    hidden = w1.shape[0]
    out_dim = w2.shape[0]

    hidden_p = _round_up(hidden, 8)
    if hidden_p != hidden:
        pad = hidden_p - hidden
        w1 = jnp.pad(w1, ((0, pad), (0, 0)))   # zero rows -> relu(0) = 0
        b1 = jnp.pad(b1, (0, pad))
        w2 = jnp.pad(w2, ((0, 0), (0, pad)))   # zero cols -> no contribution

    wcat = jnp.concatenate([w1, ws], axis=0).astype(jnp.bfloat16)   # (Hp+O, C_in)
    b1c = b1.reshape(hidden_p, 1).astype(jnp.float32)               # (Hp, 1)
    w2b = w2.astype(jnp.bfloat16)                                   # (O, Hp)
    b2s = (b2 + bs).reshape(out_dim, 1).astype(jnp.float32)         # (O, 1)
    return (wcat, b1c, w2b, b2s)


# --------------------------------------------------------------------------- #
# Forward wrapper
# --------------------------------------------------------------------------- #
@jax.jit
def mlp_res_forward(x, packed):
    """x: (B, C_in, N) float32 (PyTorch NCW layout). Returns (B, out_dim, N) f32."""
    wcat, b1c, w2b, b2s = packed
    out_dim, hidden_p = w2b.shape
    B, C_in, N = x.shape

    # Pad the point dim to a multiple of 128 (lane tile); padded columns are
    # independent of the valid ones and get sliced off afterwards.
    N_pad = _round_up(N, 128)
    if N_pad != N:
        x = jnp.pad(x, ((0, 0), (0, 0), (0, N_pad - N)))

    tile_n = _pick_tile_n(N_pad, B)
    grid = (B, N_pad // tile_n)

    flops = 2 * B * N_pad * (C_in * (hidden_p + out_dim) + hidden_p * out_dim)
    bytes_accessed = (B * C_in * N_pad * 4                  # x (f32, single read)
                      + B * out_dim * N_pad * 4             # out (f32)
                      + (hidden_p + out_dim) * C_in * 2     # fused [W1; Ws] (bf16)
                      + out_dim * hidden_p * 2              # W2 (bf16)
                      + (hidden_p + out_dim) * 4)           # biases

    kernel = functools.partial(_mlp_res_kernel, hidden=hidden_p)

    out = pl.pallas_call(
        kernel,
        out_shape=jax.ShapeDtypeStruct((B, out_dim, N_pad), jnp.float32),
        grid_spec=pltpu.PrefetchScalarGridSpec(
            num_scalar_prefetch=0,
            grid=grid,
            in_specs=[
                pl.BlockSpec((1, C_in, tile_n), lambda b, n: (b, 0, n)),        # x (f32)
                pl.BlockSpec((hidden_p + out_dim, C_in), lambda b, n: (0, 0)),  # [W1;Ws]
                pl.BlockSpec((hidden_p, 1), lambda b, n: (0, 0)),               # b1
                pl.BlockSpec((out_dim, hidden_p), lambda b, n: (0, 0)),         # W2
                pl.BlockSpec((out_dim, 1), lambda b, n: (0, 0)),                # b2 + bs
            ],
            out_specs=pl.BlockSpec((1, out_dim, tile_n), lambda b, n: (b, 0, n)),
        ),
        compiler_params=pltpu.CompilerParams(
            dimension_semantics=("parallel", "parallel"),
        ),
        cost_estimate=pl.CostEstimate(
            flops=flops, transcendentals=0, bytes_accessed=bytes_accessed),
    )(x, wcat, b1c, w2b, b2s)

    if N_pad != N:
        out = out[:, :, :N]
    return out


# --------------------------------------------------------------------------- #
# Reference + test harness
# --------------------------------------------------------------------------- #
def init_params(key, in_dim, hidden_dim, out_dim):
    """Deterministic synthetic weights in PyTorch Conv1d (out, in) orientation."""
    k1, k2, k3, k4, k5, k6 = jax.random.split(key, 6)
    w1 = jax.random.normal(k1, (hidden_dim, in_dim), jnp.float32) * 0.1
    b1 = jax.random.normal(k2, (hidden_dim,), jnp.float32) * 0.1
    w2 = jax.random.normal(k3, (out_dim, hidden_dim), jnp.float32) * 0.1
    b2 = jax.random.normal(k4, (out_dim,), jnp.float32) * 0.1
    ws = jax.random.normal(k5, (out_dim, in_dim), jnp.float32) * 0.1
    bs = jax.random.normal(k6, (out_dim,), jnp.float32) * 0.1
    return (w1, b1, w2, b2, ws, bs)


def mlp_res_reference(x, params):
    """Plain-JAX f32 reference mirroring the PyTorch forward (NCW layout)."""
    w1, b1, w2, b2, ws, bs = params
    h = jnp.maximum(jnp.einsum('hc,bcn->bhn', w1, x) + b1[None, :, None], 0.0)
    out = jnp.einsum('oh,bhn->bon', w2, h) + b2[None, :, None]
    sc = jnp.einsum('oc,bcn->bon', ws, x) + bs[None, :, None]
    return out + sc


if __name__ == "__main__":
    key = jax.random.PRNGKey(0)
    kx, kp, kx2, kp3, kx3 = jax.random.split(key, 5)

    # Test 1: PointNet2-style shapes; N a multiple of 128, tiled on lanes.
    B, in_dim, hidden_dim, out_dim, N = 2, 16, 32, 16, 1024
    x = jax.random.normal(kx, (B, in_dim, N), jnp.float32)
    params = init_params(kp, in_dim, hidden_dim, out_dim)
    packed = pack_params(params)  # packed once at init, not per forward call

    out = jax.block_until_ready(mlp_res_forward(x, packed))
    ref = mlp_res_reference(x, params)
    assert out.shape == (B, out_dim, N)
    # bf16 MXU inputs + f32 accumulation vs f32 reference.
    assert jnp.allclose(out, ref, atol=5e-2, rtol=5e-2)

    # Test 2: tiny N (not a multiple of 128) -> exercises the pad/slice path.
    x2 = jax.random.normal(kx2, (B, in_dim, 8), jnp.float32)
    out2 = jax.block_until_ready(mlp_res_forward(x2, packed))
    ref2 = mlp_res_reference(x2, params)
    assert out2.shape == (B, out_dim, 8)
    assert jnp.allclose(out2, ref2, atol=5e-2, rtol=5e-2)

    # Test 3: odd hidden (padded to a multiple of 8) and ragged N.
    params3 = init_params(kp3, in_dim, 20, out_dim)
    packed3 = pack_params(params3)
    x3 = jax.random.normal(kx3, (B, in_dim, 200), jnp.float32)
    out3 = jax.block_until_ready(mlp_res_forward(x3, packed3))
    ref3 = mlp_res_reference(x3, params3)
    assert out3.shape == (B, out_dim, 200)
    assert jnp.allclose(out3, ref3, atol=5e-2, rtol=5e-2)

    print("KERNEL_OK")
</pallas_src>

<mosaic_0001>
module attributes {stable_mosaic.version = 11 : i64} {
  func.func @_mlp_res_kernel(%arg0: i32, %arg1: i32, %arg2: memref<1x16x256xf32, #tpu.memory_space<vmem>>, %arg3: memref<48x16xbf16, #tpu.memory_space<vmem>>, %arg4: memref<32x1xf32, #tpu.memory_space<vmem>>, %arg5: memref<16x32xbf16, #tpu.memory_space<vmem>>, %arg6: memref<16x1xf32, #tpu.memory_space<vmem>>, %arg7: memref<1x16x256xf32, #tpu.memory_space<vmem>>) attributes {dimension_semantics = [#tpu.dimension_semantics<parallel>, #tpu.dimension_semantics<parallel>], iteration_bounds = array<i64: 2, 4>, scalar_prefetch = 0 : i64, scratch_operands = 0 : i64, tpu.core_type = #tpu.core_type<tc>, window_params = [{transform_indices = @transform_0, window_bounds = array<i64: 1, 16, 256>}, {pipeline_mode = #tpu.pipeline_mode<synchronous>, transform_indices = @transform_1, window_bounds = array<i64: 48, 16>}, {pipeline_mode = #tpu.pipeline_mode<synchronous>, transform_indices = @transform_2, window_bounds = array<i64: 32, 1>}, {pipeline_mode = #tpu.pipeline_mode<synchronous>, transform_indices = @transform_3, window_bounds = array<i64: 16, 32>}, {pipeline_mode = #tpu.pipeline_mode<synchronous>, transform_indices = @transform_4, window_bounds = array<i64: 16, 1>}, {transform_indices = @transform_5, window_bounds = array<i64: 1, 16, 256>}]} {
    %c0 = arith.constant 0 : index
    %c0_0 = arith.constant 0 : index
    %c0_1 = arith.constant 0 : index
    %0 = vector.load %arg2[%c0, %c0_0, %c0_1] : memref<1x16x256xf32, #tpu.memory_space<vmem>>, vector<1x16x256xf32>
    %1 = vector.shape_cast %0 : vector<1x16x256xf32> to vector<16x256xf32>
    %2 = arith.truncf %1 : vector<16x256xf32> to vector<16x256xbf16>
    %c0_2 = arith.constant 0 : index
    %c0_3 = arith.constant 0 : index
    %3 = vector.load %arg3[%c0_2, %c0_3] : memref<48x16xbf16, #tpu.memory_space<vmem>>, vector<48x16xbf16>
    %cst = arith.constant dense<0.000000e+00> : vector<48x256xf32>
    %4 = tpu.matmul %3, %2, %cst {dimension_numbers = #tpu.dot_dimension_numbers<[1], [0], [0], [1], [0, 0, 1, 1], [], []>} : vector<48x16xbf16>, vector<16x256xbf16>, vector<48x256xf32> -> vector<48x256xf32>
    %5 = vector.extract_strided_slice %4 {offsets = [0, 0], sizes = [32, 256], strides = [1, 1]} : vector<48x256xf32> to vector<32x256xf32>
    %c0_4 = arith.constant 0 : index
    %c0_5 = arith.constant 0 : index
    %6 = vector.load %arg4[%c0_4, %c0_5] : memref<32x1xf32, #tpu.memory_space<vmem>>, vector<32x1xf32>
    %7 = vector.broadcast %6 : vector<32x1xf32> to vector<32x256xf32>
    %8 = arith.addf %5, %7 : vector<32x256xf32>
    %cst_6 = arith.constant 0.000000e+00 : f32
    %9 = vector.broadcast %cst_6 : f32 to vector<32x256xf32>
    %10 = arith.maximumf %8, %9 : vector<32x256xf32>
    %11 = vector.extract_strided_slice %4 {offsets = [32, 0], sizes = [16, 256], strides = [1, 1]} : vector<48x256xf32> to vector<16x256xf32>
    %c0_7 = arith.constant 0 : index
    %c0_8 = arith.constant 0 : index
    %12 = vector.load %arg5[%c0_7, %c0_8] : memref<16x32xbf16, #tpu.memory_space<vmem>>, vector<16x32xbf16>
    %13 = arith.truncf %10 : vector<32x256xf32> to vector<32x256xbf16>
    %cst_9 = arith.constant dense<0.000000e+00> : vector<16x256xf32>
    %14 = tpu.matmul %12, %13, %cst_9 {dimension_numbers = #tpu.dot_dimension_numbers<[1], [0], [0], [1], [0, 0, 1, 1], [], []>} : vector<16x32xbf16>, vector<32x256xbf16>, vector<16x256xf32> -> vector<16x256xf32>
    %c0_10 = arith.constant 0 : index
    %c0_11 = arith.constant 0 : index
    %15 = vector.load %arg6[%c0_10, %c0_11] : memref<16x1xf32, #tpu.memory_space<vmem>>, vector<16x1xf32>
    %16 = vector.broadcast %15 : vector<16x1xf32> to vector<16x256xf32>
    %17 = arith.addf %14, %16 : vector<16x256xf32>
    %18 = arith.addf %17, %11 : vector<16x256xf32>
    %c0_12 = arith.constant 0 : index
    %c0_13 = arith.constant 0 : index
    %c0_14 = arith.constant 0 : index
    %19 = vector.load %arg7[%c0_12, %c0_13, %c0_14] : memref<1x16x256xf32, #tpu.memory_space<vmem>>, vector<1x16x256xf32>
    %20 = vector.shape_cast %19 : vector<1x16x256xf32> to vector<16x256xf32>
    %21 = vector.shape_cast %18 : vector<16x256xf32> to vector<1x16x256xf32>
    tpu.vector_store %arg7[%c0_12, %c0_13, %c0_14], %21 {strides = array<i32>} : memref<1x16x256xf32, #tpu.memory_space<vmem>>, vector<1x16x256xf32>,
    return
  }
  func.func @transform_0(%arg0: i32, %arg1: i32) -> (i32, i32, i32) {
    %c0_i32 = arith.constant 0 : i32
    %c0_i32_0 = arith.constant 0 : i32
    return %arg0, %c0_i32, %arg1 : i32, i32, i32
  }
  func.func @transform_1(%arg0: i32, %arg1: i32) -> (i32, i32) {
    %c0_i32 = arith.constant 0 : i32
    %c0_i32_0 = arith.constant 0 : i32
    %c0_i32_1 = arith.constant 0 : i32
    return %c0_i32, %c0_i32_0 : i32, i32
  }
  func.func @transform_2(%arg0: i32, %arg1: i32) -> (i32, i32) {
    %c0_i32 = arith.constant 0 : i32
    %c0_i32_0 = arith.constant 0 : i32
    %c0_i32_1 = arith.constant 0 : i32
    return %c0_i32, %c0_i32_0 : i32, i32
  }
  func.func @transform_3(%arg0: i32, %arg1: i32) -> (i32, i32) {
    %c0_i32 = arith.constant 0 : i32
    %c0_i32_0 = arith.constant 0 : i32
    %c0_i32_1 = arith.constant 0 : i32
    return %c0_i32, %c0_i32_0 : i32, i32
  }
  func.func @transform_4(%arg0: i32, %arg1: i32) -> (i32, i32) {
    %c0_i32 = arith.constant 0 : i32
    %c0_i32_0 = arith.constant 0 : i32
    %c0_i32_1 = arith.constant 0 : i32
    return %c0_i32, %c0_i32_0 : i32, i32
  }
  func.func @transform_5(%arg0: i32, %arg1: i32) -> (i32, i32, i32) {
    %c0_i32 = arith.constant 0 : i32
    %c0_i32_0 = arith.constant 0 : i32
    return %arg0, %c0_i32, %arg1 : i32, i32, i32
  }
}

</mosaic_0001>

<bundles_post_ra>
// kernel: mlp_res_forward.1
= control target key start
LH: loop header
LB: loop body
LE: loop exit
PB: predicated region body
PF: predicated region fallthrough
CT: control target
= control target key end

     0   :  { %10 = vsyncpa [#allocation3], 0  ;;  %s1117_s0 = inlined_call_operand.hbm [shape: f32[2,16,1024], index: 0, kind: input, shape index: {}]   ;;  %s1118_s1 = inlined_call_operand.vmem [shape: bf16[48,16], index: 1, kind: input, shape index: {}]   ;;  %s1119_s2 = inlined_call_operand.vmem [shape: f32[32,1], index: 2, kind: input, shape index: {}]   ;;  %s1120_s3 = inlined_call_operand.vmem [shape: bf16[16,32], index: 3, kind: input, shape index: {}]   ;;  %s1121_s4 = inlined_call_operand.vmem [shape: f32[16,1], index: 4, kind: input, shape index: {}]   ;;  %s1122_s5 = inlined_call_operand.hbm [shape: f32[2,16,1024], index: 5, kind: output, shape index: {}]  }
   0x1   :  { %12 = vsyncpa [#allocation3 + $0x1], 0 }
   0x2   :  { %13 = vsyncpa [#allocation4], 0 }
   0x3   :  { %15 = vsyncpa [#allocation4 + $0x1], 0  ;;  %s883_s18 = smov 0   ;;  %s885_s19 = smov 0  }
   0x4   :  { %s887_s20 = smov 0   ;;  %s889_s21 = smov 0  }
   0x5   :  { %s891_s22 = smov 0   ;;  %s893_s23 = smov 0  }
   0x6   :  { %s895_s24 = smov 0   ;;  %s897_s25 = smov 0  }
   0x7 LB: > { %1126 = sst [smem:[#allocation8_spill]] %s814_s18  ;;  %s588_s26 = sadd.s32 4294967295, %s842_s25   ;;  %s842_s25 = sphi %s897_s25, %s21_s25   ;;  %s838_s24 = sphi %s895_s24, %s1144_s24   ;;  %s834_s23 = sphi %s893_s23, %s1143_s23   ;;  %s830_s22 = sphi %s891_s22, %s1142_s22   ;;  %s826_s21 = sphi %s889_s21, %s1141_s21   ;;  %s822_s20 = sphi %s887_s20, %s1140_s20   ;;  %s818_s19 = sphi %s885_s19, %s1139_s19   ;;  %s814_s18 = sphi %s883_s18, %s1138_s18  }
   0x8   : > { %s589_s27 = sadd.s32 4294967294, %s842_s25   ;;  %s30_s28 = sadd.s32 1, %s834_s23 }
   0x9   : > { %s33_s29 = sadd.s32 1, %s838_s24  ;;  %p31_p0 = scmp.ge.s32.totalorder %s30_s28, 4 }
   0xa   : > { %s42_s30 = sadd.s32 1, %s822_s20  ;;  %p49_p1 = scmp.ne.s32.totalorder %s822_s20, %s818_s19 }
   0xb   : > { %p50_p2 = scmp.eq.s32.totalorder %s842_s25, 0  ;;  %s1146_s28 = smov (%p31_p0, %s30_s28), 0 }
   0xc   : > { %1127 = sst [smem:[#allocation9_spill]] %s1146_s28  ;;  %s1148_s29 = smov (!%p31_p0, %s33_s29), %s838_s24 }
   0xd   : > { %s38_s6 = ssub.s32 %s834_s23, %s1146_s28  ;;  %p936_p3 = por %p50_p2, %p49_p1 }
   0xe   : > { %p35_p4 = scmp.ge.s32.totalorder %s1148_s29, 2  ;;  %p55_p5 = scmp.ne.s32.totalorder %s818_s19, %s814_s18 }
   0xf   : > { %p56_p6 = scmp.eq.s32.totalorder %s588_s26, 0  ;;  %p165_p7 = scmp.eq.s32.totalorder %s588_s26, 7 }
  0x10   : > { %s1150_s29 = smov (%p35_p4, %s1148_s29), 0  ;;  %p171_p10 = scmp.eq.s32.totalorder %s589_s27, 7 }
  0x11   : > { %p944_p8 = por %p56_p6, %p55_p5  ;;  %p948_p9 = por %p165_p7, %p49_p1 }
  0x12   : > { %s37_s10 = ssub.s32 %s838_s24, %s1150_s29  ;;  %p954_p12 = por %p171_p10, %p55_p5 }
  0x13   : > { %s1130_s9 = scalar_select %p948_p9, 1, 0 }
  0x14   : > { %s39_s11 = sor.u32 %s38_s6, %s37_s10  ;;  %p635_p13 = scmp.lt.s32.totalorder %s842_s25, 8 }
  0x15   : > { %p40_p11 = scmp.eq.s32.totalorder %s39_s11, 0  ;;  %s203_s13 = sand.u32 1, %s822_s20  }
  0x16   : > { %s1131_s12 = scalar_select %p954_p12, 1, 0 }
  0x17   : > { %s961_s14 = scalar_select %p40_p11, %s822_s20, %s42_s30  }
  0x18   : > { %s592_s15 = sshll.u32 %s203_s13, 5  ;;  %s593_s16 = sshll.u32 %s834_s23, 1 }
  0x19   : > { %s594_s17 = sshll.u32 %s838_s24, 4  ;;  %s207_s26 = scalar_lea.vmem [#allocation2], %s592_s15 }
  0x1a   : > { %s216_s28 = sshll.u32 %s207_s26, 4  ;;  %s213_s18 = sadd.s32 %s594_s17, %s593_s16  ;;  %s965_s28 = int_to_ptr.vmem [resolvable:$true] %s216_s28 }
  0x1b   : > { %s595_s27 = sshll.u32 %s213_s18, 7  ;;  %p969_p0 = pnand %p635_p13, %p936_p3 }
  0x1c   : > { %s976_s30 = scalar_lea.hbm %s1117_s0, %s595_s27  ;;  %s979_s15 = scalar_lea.sflag [#allocation3], %s203_s13 }
  0x1d   : > { %s714_s18 = scalar_lea.hbm %s976_s30, 512  ;;  %p716_p3 = pneg %p969_p0 }
  0x1e   : > { %p715_p2 = scmp.ne.s32.totalorder %s976_s30, %s714_s18  ;;  %s719_s17 = scalar_lea.hbm %s1117_s0, 4096 }
  0x1f   : > { %p720_p6 = scmp.lt.u32.totalorder %s976_s30, %s1117_s0  ;;  %p721_p7 = scmp.lt.u32.totalorder %s719_s17, %s714_s18 }
  0x20   : > { %p717_p4 = pnand %p716_p3, %p715_p2  ;;  %p723_p11 = scmp.lt.u32.totalorder %s714_s18, %s976_s30 }
  0x21   : > { %p722_p10 = por %p721_p7, %p720_p6 }
  0x22   : > { %p718_p5 = pneg %p717_p4 }
  0x23   : > { %p724_p13 = por %p723_p11, %p722_p10 }
  0x25   : > { %p725_p1 = pnand %p724_p13, %p718_p5 }
  0x27   : > { %728 = shalt.err (!%p725_p1)
}
  0x28   : > { %s729_s13 = scalar_lea.vmem %s965_s28, 512  ;;  %s844_s10 = smov [#allocation2]  }
  0x29   : > { %p730_p2 = scmp.ne.s32.totalorder %s965_s28, %s729_s13  ;;  %s734_s11 = sshll.u32 %s844_s10, 4  ;;  %s735_s11 = int_to_ptr.vmem [resolvable:$false] %s734_s11 }
  0x2a   : > { %s736_s7 = scalar_lea.vmem %s735_s11, 1024  ;;  %p737_p9 = scmp.lt.s32.totalorder %s965_s28, %s735_s11 }
  0x2b   : > { %p732_p4 = pnand %p730_p2, %p716_p3  ;;  %p738_p6 = scmp.lt.s32.totalorder %s736_s7, %s729_s13 }
  0x2d   : > { %p733_p12 = pneg %p732_p4  ;;  %p739_p7 = por %p738_p6, %p737_p9 }
  0x2f   : > { %p740_p10 = pnand %p739_p7, %p733_p12 }
  0x31   : > { %743 = shalt.err (!%p740_p10)
}
  0x32   : > { %s845_s18 = smov 1024   ;;  %s846_s16 = smov 256  }
  0x33   : > { %s847_s17 = smov 16   ;;  %p224_p1 = scmp.lt.s32.totalorder %s842_s25, 9 }
  0x34   : > { %630 = dma.hbm_to_vmem [thread:$0]  (!%p969_p0), %s976_s30, 512, %s965_s28, %s979_s15, %s845_s18, %s846_s16, %s847_s17  }
  0x35   : > { %p1133_p3 = scmp.ge.s32.totalorder %s842_s25, 1 }
  0x37   : > { %p225_p5 = pnand %p1133_p3, %p224_p1 }
  0x38   : > { %s1011_s26 = sand.u32 (!%p225_p5), 1, %s818_s19  }
  0x39   : > { %228 = sbr.rel (%p225_p5) target bundleno = 534 (0x216), region = 40  ;;  %s597_s27 = sshll.u32 (!%p225_p5), %s1011_s26, 5 }
  0x3a   : > { %s231_s13 = scalar_lea.sflag (!%p225_p5), [#allocation3], %s1011_s26  ;;  %s234_s10 = scalar_lea.vmem (!%p225_p5), [#allocation2], %s597_s27 }
  0x40   : > { %805 = dma.done.wait (%p944_p8), %s231_s13, 512  }
  0x41   : > { %807 = vsyncadd (%p944_p8), %s231_s13, 4294966784  ;;  %v848_v0 = vmov 0   ;;  %v265_v1 = vld [vmem:[%s234_s10 + $0x8] sm:$0xff]  ;;  %v267_v2 = vld [vmem:[%s234_s10 + $0x18] sm:$0xff]  ;;  %vm291_vm0 = vcmask 130048   ;;  %vm427_vm1 = vcmask 261120  }
  0x42   : > { %333 = vmatprep.mubr.bf16.mxu0 %v848_v0  ;;  %343 = vmatprep.mubr.bf16.mxu1 %v848_v0  ;;  %v264_v3 = vld [vmem:[%s234_s10] sm:$0xff]  ;;  %v269_v4 = vpack.c.bf16 %v267_v2, %v265_v1  ;;  %v266_v5 = vld [vmem:[%s234_s10 + $0x10] sm:$0xff]  ;;  %v711_v8 = vld [vmem:[%s1118_s1 + $0x8] sm:$0xff]   ;;  %s608_s16 = sshll.u32 %s826_s21, 1  ;;  %s609_s17 = sshll.u32 %s830_s22, 4 }
  0x43   : > { %708 = vset.pattern.permute.xlu0 %v848_v0  ;;  %709 = vset.pattern.permute.xlu1 %v848_v0  ;;  %v268_v6 = vpack.c.bf16 %v266_v5, %v264_v3  ;;  %v710_v7 = vld [vmem:[%s1118_s1] sm:$0xff]   ;;  %v366_v10 = vld [vmem:[%s1119_s2 + $0x10] sm:$0xff]  ;;  %v365_v11 = vld [vmem:[%s1119_s2 + $0x8] sm:$0xff]  ;;  %s495_s13 = sadd.s32 %s609_s17, %s608_s16  ;;  %s260_s10 = scalar_lea.vmem [#allocation5], %s597_s27 }
  0x44   : > { %301 = vmatprep.subr.bf16.mxu0 %v269_v4  ;;  %613 = vmatprep.subr.bf16.mxu1 %v269_v4  ;;  %v364_v9 = vld [vmem:[%s1119_s2] sm:$0xff]  ;;  %v367_v12 = vld [vmem:[%s1119_s2 + $0x18] sm:$0xff]  ;;  %v411_v14 = vld [vmem:[%s1121_s4 + $0x8] sm:$0xff]  ;;  %s498_s28 = sshll.u32 %s260_s10, 4  ;;  %s610_s6 = sshll.u32 %s495_s13, 7  ;;  %s1058_s28 = int_to_ptr.vmem [resolvable:$true] %s498_s28 }
  0x45   : > { %302 = vmatpush1.bf16.msra.mxu0 %v268_v6  ;;  %614 = vmatpush1.bf16.msra.mxu1 %v268_v6  ;;  %v410_v13 = vld [vmem:[%s1121_s4] sm:$0xff]  ;;  %v712_v15 = vld [vmem:[%s1118_s1 + $0x10] sm:$0xff]   ;;  %s1063_s27 = scalar_lea.hbm %s1122_s5, %s610_s6  ;;  %s483_s30 = scalar_lea.sflag [#allocation4], %s1011_s26 }
  0x46   : > { %370 = vperm.xlu0 %708, %v364_v9   ;;  %380 = vperm.xlu1 %709, %v366_v10   ;;  %v713_v52 = vld [vmem:[%s1120_s3] sm:$0xff]   ;;  %s744_s8 = scalar_lea.vmem %s1058_s28, 512  ;;  %p1134_p9 = scmp.ne.s32.totalorder %s1130_s9, 0 }
  0x47   : > { %p745_p8 = scmp.ne.s32.totalorder %s1058_s28, %s744_s8  ;;  %s849_s15 = smov [#allocation5]  }
  0x48   : > { %602 = vmatmul.mubr.msk.bf16.vlgmr.msra.gmra.mrb[0].mxu0 %vm291_vm0, %v710_v7  ;;  %603 = vmatmul.mubr.msk.bf16.vlgmr.msra.gmra.mrb[0].mxu1 %vm291_vm0, %v711_v8  ;;  %s748_s11 = sshll.u32 %s849_s15, 4  ;;  %s749_s11 = int_to_ptr.vmem [resolvable:$false] %s748_s11 }
  0x49   : > { %353 = vmatprep.mubr.bf16.mxu1 %v848_v0  ;;  %463 = vmatprep.mubr.bf16.mxu0 %v848_v0  ;;  %p746_p12 = pnand %p745_p8, %p1134_p9  ;;  %s750_s7 = scalar_lea.vmem %s749_s11, 1024 }
  0x4a   : > { %375 = vperm.xlu0 %708, %v365_v11   ;;  %385 = vperm.xlu1 %709, %v367_v12   ;;  %p751_p11 = scmp.lt.s32.totalorder %s1058_s28, %s749_s11  ;;  %p752_p13 = scmp.lt.s32.totalorder %s750_s7, %s744_s8 }
  0x4b   : > { %p747_p0 = pneg %p746_p12 }
  0x4c   : > { %p753_p2 = por %p752_p13, %p751_p11 }
  0x4e   : > { %414 = vperm.xlu0 %708, %v410_v13   ;;  %419 = vperm.xlu1 %709, %v411_v14   ;;  %p754_p4 = pnand %p753_p2, %p747_p0 }
  0x50   : > { %604 = vmatmul.mubr.msk.bf16.gmra.mrb[4].mxu1 %vm291_vm0, %v712_v15 }
  0xc5   : > { %v371_v16 = vpop.permute.xlu0 %370  ;;  %v381_v17 = vpop.permute.xlu1 %380 }
  0xc9   : > { %v376_v18 = vpop.permute.xlu0 %375  ;;  %v386_v19 = vpop.permute.xlu1 %385 }
  0xcd   : > { %v415_v53 = vpop.permute.xlu0 %414  ;;  %v420_v55 = vpop.permute.xlu1 %419 }
 0x11b   : > { %v335_v20 = vpop.f32.mrb[0].mxu0  ;;  %v345_v21 = vpop.f32.mrb[0].mxu1 }
 0x11c   : > { %v388_v22 = vadd.f32 %v371_v16, %v335_v20  ;;  %v392_v23 = vadd.f32 %v381_v17, %v345_v21  ;;  %v337_v24 = vpop.f32.mrb[1].mxu0  ;;  %v347_v25 = vpop.f32.mrb[1].mxu1 }
 0x11d   : > { %v389_v26 = vadd.f32 %v371_v16, %v337_v24  ;;  %v393_v27 = vadd.f32 %v381_v17, %v347_v25  ;;  %v339_v28 = vpop.f32.mrb[2].mxu0  ;;  %v349_v29 = vpop.f32.mrb[2].mxu1 }
 0x11e   : > { %v400_v30 = vmax.f32 %v392_v23, 0.0  ;;  %v390_v31 = vadd.f32 %v376_v18, %v339_v28  ;;  %v394_v32 = vadd.f32 %v386_v19, %v349_v29  ;;  %v341_v33 = vpop.f32.mrb[3].mxu0  ;;  %v351_v34 = vpop.f32.mrb[3].mxu1  ;;  %v396_v38 = vmax.f32 %v388_v22, 0.0 }
 0x11f   : > { %v401_v35 = vmax.f32 %v393_v27, 0.0  ;;  %v391_v36 = vadd.f32 %v376_v18, %v341_v33  ;;  %v395_v37 = vadd.f32 %v386_v19, %v351_v34  ;;  %v397_v41 = vmax.f32 %v389_v26, 0.0 }
 0x120   : > { %v398_v39 = vmax.f32 %v390_v31, 0.0  ;;  %v402_v40 = vmax.f32 %v394_v32, 0.0 }
 0x121   : > { %v399_v42 = vmax.f32 %v391_v36, 0.0  ;;  %v403_v43 = vmax.f32 %v395_v37, 0.0 }
 0x122   : > { %v406_v44 = vpack.c.bf16 %v398_v39, %v396_v38  ;;  %v408_v45 = vpack.c.bf16 %v402_v40, %v400_v30 }
 0x123   : > { %v407_v46 = vpack.c.bf16 %v399_v42, %v397_v41  ;;  %v409_v47 = vpack.c.bf16 %v403_v43, %v401_v35  ;;  %v355_v48 = vpop.f32.mrb[4].mxu1 }
 0x124   : > { %v357_v49 = vpop.f32.mrb[5].mxu1  ;;  %v615_v54 = vadd.f32 %v415_v53, %v355_v48 }
 0x125   : > { %v359_v50 = vpop.f32.mrb[6].mxu1  ;;  %431 = vmatprep.subr.bf16.mxu0 %v407_v46  ;;  %v617_v56 = vadd.f32 %v415_v53, %v357_v49 }
 0x126   : > { %v361_v51 = vpop.f32.mrb[7].mxu1  ;;  %432 = vmatpush1.bf16.msra.mxu0 %v406_v44  ;;  %v619_v58 = vadd.f32 %v420_v55, %v359_v50 }
 0x127   : > { %433 = vmatprep.subr.bf16.mxu0 %v409_v47  ;;  %v621_v61 = vadd.f32 %v420_v55, %v361_v51 }
 0x12a   : > { %434 = vmatpush1.bf16.msra.mxu0 %v408_v45 }
 0x12d   : > { %606 = vmatmul.mubr.msk.bf16.vlgmr.msra.gmra.mrb[4].mxu0 %vm427_vm1, %v713_v52 }
 0x200   : > { %v465_v57 = vpop.f32.mrb[4].mxu0 }
 0x201   : > { %v616_v59 = vadd.f32 %v615_v54, %v465_v57  ;;  %v467_v60 = vpop.f32.mrb[5].mxu0 }
 0x202   : > { %v618_v62 = vadd.f32 %v617_v56, %v467_v60  ;;  %v469_v63 = vpop.f32.mrb[6].mxu0 }
 0x203   : > { %478 = vst [vmem:[%s260_s10] sm:$0xff] %v616_v59  ;;  %v620_v0 = vadd.f32 %v619_v58, %v469_v63  ;;  %v471_v1 = vpop.f32.mrb[7].mxu0 }
 0x204   : > { %479 = vst [vmem:[%s260_s10 + $0x8] sm:$0xff] %v618_v62  ;;  %v622_v2 = vadd.f32 %v621_v61, %v471_v1 }
 0x205   : > { %480 = vst [vmem:[%s260_s10 + $0x10] sm:$0xff] %v620_v0 }
 0x206   : > { %481 = vst [vmem:[%s260_s10 + $0x18] sm:$0xff] %v622_v2 }
 0x207   : > { %757 = shalt.err (!%p754_p4)
}
 0x208   : > { %s758_s18 = scalar_lea.hbm %s1063_s27, 512  ;;  %s762_s13 = scalar_lea.hbm %s1122_s5, 4096 }
 0x209   : > { %p759_p6 = scmp.ne.s32.totalorder %s1063_s27, %s758_s18  ;;  %p763_p1 = scmp.lt.u32.totalorder %s1063_s27, %s1122_s5 }
 0x20a   : > { %p764_p3 = scmp.lt.u32.totalorder %s762_s13, %s758_s18  ;;  %p766_p8 = scmp.lt.u32.totalorder %s758_s18, %s1063_s27 }
 0x20b   : > { %p760_p7 = pnand %p759_p6, %p1134_p9 }
 0x20c   : > { %p765_p5 = por %p764_p3, %p763_p1 }
 0x20d   : > { %p761_p10 = pneg %p760_p7 }
 0x20e   : > { %p767_p12 = por %p766_p8, %p765_p5 }
 0x210   : > { %p768_p0 = pnand %p767_p12, %p761_p10 }
 0x212   : > { %771 = shalt.err (!%p768_p0)
}
 0x213   : > { %s850_s21 = smov 256   ;;  %s851_s22 = smov 1024  }
 0x214   : > { %s852_s8 = smov 16  }
 0x215   : > { %625 = dma.vmem_to_hbm [thread:$0]  (%p1134_p9), %s1058_s28, 512, %s1063_s27, %s483_s30, %s850_s21, %s851_s22, %s852_s8  }
 0x216 PF: > { %s1135_s15 = sld [smem:[#allocation8_spill]]  ;;  %p636_p11 = scmp.ge.s32.totalorder %s842_s25, 2 }
 0x217   : > { %p1136_p13 = scmp.ne.s32.totalorder %s1131_s12, 0 }
 0x219   : > { %p632_p2 = pnand %p636_p11, %p1136_p13 }
 0x21c   : > { %s513_s11 = sand.u32 1, %s1135_s15  }
 0x21d   : > { %s514_s7 = scalar_lea.sflag [#allocation4], %s513_s11 }
 0x21e   : > { %809 = dma.done.wait (!%p632_p2), %s514_s7, 512  }
 0x21f   : > { %811 = vsyncadd (!%p632_p2), %s514_s7, 4294966784  ;;  %s21_s25 = sadd.s32 1, %s842_s25   ;;  %s1137_s9 = sld [smem:[#allocation9_spill]] }
 0x220   : > { %p18_p4 = scmp.ge.s32.totalorder %s21_s25, 10   ;;  %s1138_s18 = smov %s818_s19 }
 0x221   : > { %s1139_s19 = smov %s822_s20  ;;  %s1140_s20 = smov %s961_s14 }
 0x222   : > { %s1141_s21 = smov %s834_s23  ;;  %s1142_s22 = smov %s838_s24 }
 0x223   : > { %s1144_s24 = smov %s1150_s29  ;;  %20 = sbr.rel (!%p18_p4) target bundleno = 7 (0x7), region = 85 }
 0x225   : > { %s1143_s23 = smov %s1137_s9 }
 0x22a   :  { %519 = vsyncpa [#allocation3], 1 }
 0x22b   :  { %521 = vsyncpa [#allocation3 + $0x1], 1 }
 0x22c   :  { %522 = vsyncpa [#allocation4], 1 }
 0x22d   :  { %524 = vsyncpa [#allocation4 + $0x1], 1 }

</bundles_post_ra>
